<compile_context>
chip_gen: v7x
topology: tpu7x:2x2x1
jax: 0.10.0
libtpu: 0.0.40
codegen_flags: <defaults>
</compile_context>

<pallas_src>
import functools

import jax
import jax.numpy as jnp
from jax.experimental import pallas as pl
from jax.experimental.pallas import tpu as pltpu

_LANE = 128
_MAX_TM = 8192
_VMEM_BUDGET = 12 * 1024 * 1024  # stays under default scoped VMEM on v5e/v6e/v7x


def _pick_tm(C, HW):
    """Largest lane tile keeping (dbl-buffered inputs + 3 accumulators) in budget."""
    c_sub = ((C + 7) // 8) * 8
    # bytes per lane-column: 2x logit bufs (f32 worst case, sublane-padded C),
    # 2x label bufs (1 row padded to 8 sublanes), 3x f32 scratch accumulators.
    bytes_per_col = 4 * (2 * c_sub + 2 * 8 + 3 * c_sub)
    cap = (_VMEM_BUDGET // bytes_per_col) // _LANE * _LANE
    cap = max(_LANE, min(_MAX_TM, cap))
    if HW < _LANE:
        return HW                          # block last dim == full array dim
    if HW % _LANE == 0:
        return min(cap, HW)
    return min(cap, (HW // _LANE) * _LANE)


def _make_dice_sums_kernel(C, TM, HW, num_j, ignore_index, p_exp, mask_tail):
    """Kernel producing per-batch, per-class [sum(p*t), sum(p^p), sum(t)] -> (1, C, 3)."""

    def powp(x):
        if p_exp == 1:
            return x
        if isinstance(p_exp, int) and p_exp > 1:
            y = x
            for _ in range(p_exp - 1):       # e.g. p_exp == 2 -> x * x on the VPU
                y = y * x
            return y
        return x ** p_exp

    def kernel(p_ref, t_ref, out_ref, acc_pt, acc_p, acc_t):
        j = pl.program_id(1)

        @pl.when(j == 0)
        def _():
            acc_pt[...] = jnp.zeros_like(acc_pt)
            acc_p[...] = jnp.zeros_like(acc_p)
            acc_t[...] = jnp.zeros_like(acc_t)

        def accumulate(tail):
            logits = p_ref[0].astype(jnp.float32)          # (C, TM)
            labels = t_ref[0]                              # (1, TM) int32
            if tail:
                col = jax.lax.broadcasted_iota(jnp.int32, (1, TM), 1) + j * TM
                valid = col < HW                           # (1, TM) bool
                logits = jnp.where(valid, logits, 0.0)     # keep padded lanes finite

            # Softmax over the class (sublane) axis: one reciprocal per pixel.
            m = jnp.max(logits, axis=0, keepdims=True)
            e = jnp.exp(logits - m)
            inv = pl.reciprocal(jnp.sum(e, axis=0, keepdims=True))
            prob = e * inv                                  # (C, TM)

            # One-hot target; ignore_index positions become all-zero rows
            # (matches the PyTorch code zeroing class 0 at ignored positions).
            cls = jax.lax.broadcasted_iota(jnp.int32, (C, TM), 0)
            hit = labels == cls
            if ignore_index is not None:
                hit = hit & (labels != ignore_index)

            pw = powp(prob)
            if tail:
                hit = hit & valid
                pw = jnp.where(valid, pw, 0.0)
            onehot = hit.astype(jnp.float32)

            # Elementwise VPU accumulation; no cross-lane work on the hot path.
            acc_pt[...] += prob * onehot
            acc_p[...] += pw
            acc_t[...] += onehot

        if mask_tail:
            @pl.when(j < num_j - 1)
            def _():
                accumulate(False)

            @pl.when(j == num_j - 1)
            def _():
                accumulate(True)
        else:
            accumulate(False)

        # Cross-lane reduce + tiny (C, 3) store only once per batch element.
        @pl.when(j == num_j - 1)
        def _():
            s_pt = jnp.sum(acc_pt[...], axis=1, keepdims=True)   # (C, 1)
            s_p = jnp.sum(acc_p[...], axis=1, keepdims=True)     # (C, 1)
            s_t = jnp.sum(acc_t[...], axis=1, keepdims=True)     # (C, 1)
            out_ref[0] = jnp.concatenate([s_pt, s_p, s_t], axis=1)

    return kernel


@functools.partial(jax.jit, static_argnames=("ignore_index", "smooth", "p_exp"))
def dice_loss_gai(predict, target, weight=None, *, ignore_index=None,
                  smooth=1.0, p_exp=1):
    """JAX/Pallas equivalent of DiceLoss_gai.forward.

    predict: [N, C, H, W] float logits (any float dtype; cast to f32 in-kernel)
    target : [N, H, W]    int class labels
    weight : optional [C] float
    """
    N, C, H, W = predict.shape
    HW = H * W

    logits = predict.reshape(N, C, HW)                     # free reshape, native layout
    labels = target.reshape(N, 1, HW).astype(jnp.int32)

    TM = _pick_tm(C, HW)
    num_j = pl.cdiv(HW, TM)
    mask_tail = (HW % TM) != 0

    kernel = _make_dice_sums_kernel(C, TM, HW, num_j, ignore_index, p_exp, mask_tail)

    partials = pl.pallas_call(
        kernel,
        out_shape=jax.ShapeDtypeStruct((N, C, 3), jnp.float32),
        grid_spec=pltpu.PrefetchScalarGridSpec(
            num_scalar_prefetch=0,
            grid=(N, num_j),
            in_specs=[
                pl.BlockSpec((1, C, TM), lambda n, j: (n, 0, j)),
                pl.BlockSpec((1, 1, TM), lambda n, j: (n, 0, j)),
            ],
            out_specs=pl.BlockSpec((1, C, 3), lambda n, j: (n, 0, 0)),
            scratch_shapes=[
                pltpu.VMEM((C, TM), jnp.float32),   # sum(p * t)
                pltpu.VMEM((C, TM), jnp.float32),   # sum(p ** p_exp)
                pltpu.VMEM((C, TM), jnp.float32),   # sum(t)
            ],
        ),
        compiler_params=pltpu.CompilerParams(
            dimension_semantics=("parallel", "arbitrary")),
    )(logits, labels)

    # Tiny epilogue on the host-side XLA graph: combine per-batch partials and
    # form the per-class Dice losses exactly as the PyTorch loop does.
    sums = jnp.sum(partials, axis=0)                       # (C, 3)
    s_pt, s_p, s_t = sums[:, 0], sums[:, 1], sums[:, 2]
    num = 2.0 * s_pt + smooth
    den = s_p + s_t + smooth
    loss_c = 1.0 - num / den                               # (C,)

    if ignore_index is not None:
        class_mask = jnp.arange(C) != ignore_index
    else:
        class_mask = jnp.ones((C,), dtype=bool)

    if weight is not None:
        total = jnp.sum(jnp.where(class_mask, loss_c * weight, 0.0))
        return total / jnp.sum(weight)
    total = jnp.sum(jnp.where(class_mask, loss_c, 0.0))
    return total / C


def _reference_dice_loss(predict, target, weight=None, ignore_index=None,
                         smooth=1.0, p_exp=1):
    """Pure-JAX mirror of the PyTorch forward (for correctness check)."""
    N, C = predict.shape[0], predict.shape[1]
    prob = jax.nn.softmax(predict.astype(jnp.float32), axis=1)
    if ignore_index is not None:
        ign = target == ignore_index
    else:
        ign = jnp.zeros(target.shape, dtype=bool)
    onehot = jax.nn.one_hot(jnp.where(ign, 0, target), C)       # [N, H, W, C]
    onehot = onehot * (~ign)[..., None]
    onehot = jnp.transpose(onehot, (0, 3, 1, 2))                # [N, C, H, W]

    total = 0.0
    for i in range(C):
        if i == ignore_index:
            continue
        pi = prob[:, i].reshape(N, -1)
        ti = onehot[:, i].reshape(N, -1)
        num = jnp.sum(pi * ti) * 2.0 + smooth
        den = jnp.sum(pi ** p_exp + ti ** p_exp) + smooth
        l = 1.0 - num / den
        if weight is not None:
            l = l * weight[i]
        total = total + l
    denom = C if weight is None else jnp.sum(weight)
    return total / denom


if __name__ == "__main__":
    key = jax.random.PRNGKey(0)
    k1, k2, k3, k4 = jax.random.split(key, 4)

    # Main check: N=2, C=4, 16x16, ignore_index exercises one-hot mask + class skip.
    N, C, H, W = 2, 4, 16, 16
    predict = jax.random.normal(k1, (N, C, H, W), dtype=jnp.float32)
    target = jax.random.randint(k2, (N, H, W), 0, C, dtype=jnp.int32)
    ignore_index = 2

    loss = dice_loss_gai(predict, target, ignore_index=ignore_index,
                         smooth=1.0, p_exp=1)
    loss = jax.block_until_ready(loss)
    ref = _reference_dice_loss(predict, target, ignore_index=ignore_index,
                               smooth=1.0, p_exp=1)
    assert jnp.allclose(loss, ref, rtol=1e-5, atol=1e-5), (loss, ref)

    # Exercise the p_exp == 2 multiply-chain path.
    loss2 = jax.block_until_ready(
        dice_loss_gai(predict, target, ignore_index=ignore_index,
                      smooth=1.0, p_exp=2))
    ref2 = _reference_dice_loss(predict, target, ignore_index=ignore_index,
                                smooth=1.0, p_exp=2)
    assert jnp.allclose(loss2, ref2, rtol=1e-5, atol=1e-5), (loss2, ref2)

    # Exercise the masked tail-tile path (HW not a multiple of TM).
    H2, W2 = 16, 20
    predict3 = jax.random.normal(k3, (N, C, H2, W2), dtype=jnp.float32)
    target3 = jax.random.randint(k4, (N, H2, W2), 0, C, dtype=jnp.int32)
    loss3 = jax.block_until_ready(
        dice_loss_gai(predict3, target3, ignore_index=ignore_index,
                      smooth=1.0, p_exp=1))
    ref3 = _reference_dice_loss(predict3, target3, ignore_index=ignore_index,
                                smooth=1.0, p_exp=1)
    assert jnp.allclose(loss3, ref3, rtol=1e-5, atol=1e-5), (loss3, ref3)

    # Exercise the class-weight path.
    weight = jnp.array([0.5, 1.0, 2.0, 1.5], dtype=jnp.float32)
    loss4 = jax.block_until_ready(
        dice_loss_gai(predict, target, weight, ignore_index=ignore_index,
                      smooth=1.0, p_exp=1))
    ref4 = _reference_dice_loss(predict, target, weight, ignore_index=ignore_index,
                                smooth=1.0, p_exp=1)
    assert jnp.allclose(loss4, ref4, rtol=1e-5, atol=1e-5), (loss4, ref4)

    print("KERNEL_OK")
</pallas_src>

<mosaic_0001>
module attributes {stable_mosaic.version = 11 : i64} {
  func.func @kernel(%arg0: i32, %arg1: i32, %arg2: memref<1x4x256xf32, #tpu.memory_space<vmem>>, %arg3: memref<1x1x256xi32, #tpu.memory_space<vmem>>, %arg4: memref<1x4x3xf32, #tpu.memory_space<vmem>>, %arg5: memref<4x256xf32, #tpu.memory_space<vmem>>, %arg6: memref<4x256xf32, #tpu.memory_space<vmem>>, %arg7: memref<4x256xf32, #tpu.memory_space<vmem>>) attributes {dimension_semantics = [#tpu.dimension_semantics<parallel>, #tpu.dimension_semantics<arbitrary>], iteration_bounds = array<i64: 2, 1>, scalar_prefetch = 0 : i64, scratch_operands = 3 : i64, tpu.core_type = #tpu.core_type<tc>, window_params = [{transform_indices = @transform_0, window_bounds = array<i64: 1, 4, 256>}, {transform_indices = @transform_1, window_bounds = array<i64: 1, 1, 256>}, {transform_indices = @transform_2, window_bounds = array<i64: 1, 4, 3>}]} {
    %c0_i32 = arith.constant 0 : i32
    %0 = arith.cmpi eq, %arg1, %c0_i32 : i32
    %1 = arith.extui %0 : i1 to i32
    %c0_i32_0 = arith.constant 0 : i32
    %2 = arith.cmpi ne, %1, %c0_i32_0 : i32
    scf.if %2 {
      %cst_21 = arith.constant 0.000000e+00 : f32
      %39 = vector.broadcast %cst_21 : f32 to vector<4x256xf32>
      %c0_22 = arith.constant 0 : index
      %c0_23 = arith.constant 0 : index
      %40 = vector.load %arg5[%c0_22, %c0_23] : memref<4x256xf32, #tpu.memory_space<vmem>>, vector<4x256xf32>
      tpu.vector_store %arg5[%c0_22, %c0_23], %39 {strides = array<i32>} : memref<4x256xf32, #tpu.memory_space<vmem>>, vector<4x256xf32>,
      %cst_24 = arith.constant 0.000000e+00 : f32
      %41 = vector.broadcast %cst_24 : f32 to vector<4x256xf32>
      %c0_25 = arith.constant 0 : index
      %c0_26 = arith.constant 0 : index
      %42 = vector.load %arg6[%c0_25, %c0_26] : memref<4x256xf32, #tpu.memory_space<vmem>>, vector<4x256xf32>
      tpu.vector_store %arg6[%c0_25, %c0_26], %41 {strides = array<i32>} : memref<4x256xf32, #tpu.memory_space<vmem>>, vector<4x256xf32>,
      %cst_27 = arith.constant 0.000000e+00 : f32
      %43 = vector.broadcast %cst_27 : f32 to vector<4x256xf32>
      %c0_28 = arith.constant 0 : index
      %c0_29 = arith.constant 0 : index
      %44 = vector.load %arg7[%c0_28, %c0_29] : memref<4x256xf32, #tpu.memory_space<vmem>>, vector<4x256xf32>
      tpu.vector_store %arg7[%c0_28, %c0_29], %43 {strides = array<i32>} : memref<4x256xf32, #tpu.memory_space<vmem>>, vector<4x256xf32>,
    } else {
    }
    %c0 = arith.constant 0 : index
    %c0_1 = arith.constant 0 : index
    %c0_2 = arith.constant 0 : index
    %3 = vector.load %arg2[%c0, %c0_1, %c0_2] : memref<1x4x256xf32, #tpu.memory_space<vmem>>, vector<1x4x256xf32>
    %4 = vector.shape_cast %3 : vector<1x4x256xf32> to vector<4x256xf32>
    %c0_3 = arith.constant 0 : index
    %c0_4 = arith.constant 0 : index
    %c0_5 = arith.constant 0 : index
    %5 = vector.load %arg3[%c0_3, %c0_4, %c0_5] : memref<1x1x256xi32, #tpu.memory_space<vmem>>, vector<1x1x256xi32>
    %6 = vector.shape_cast %5 : vector<1x1x256xi32> to vector<1x256xi32>
    %cst = arith.constant dense<0xFF800000> : vector<256xf32>
    %7 = vector.multi_reduction <maximumf>, %4, %cst [0] : vector<4x256xf32> to vector<256xf32>
    %8 = vector.shape_cast %7 : vector<256xf32> to vector<1x256xf32>
    %9 = vector.broadcast %8 : vector<1x256xf32> to vector<4x256xf32>
    %10 = arith.subf %4, %9 : vector<4x256xf32>
    %11 = math.exp %10 : vector<4x256xf32>
    %cst_6 = arith.constant dense<0.000000e+00> : vector<256xf32>
    %12 = vector.multi_reduction <add>, %11, %cst_6 [0] : vector<4x256xf32> to vector<256xf32>
    %13 = vector.shape_cast %12 : vector<256xf32> to vector<1x256xf32>
    %14 = tpu.reciprocal %13 : vector<1x256xf32> -> vector<1x256xf32>
    %15 = vector.broadcast %14 : vector<1x256xf32> to vector<4x256xf32>
    %16 = arith.mulf %11, %15 : vector<4x256xf32>
    %17 = tpu.iota {dimensions = array<i32: 0>} : vector<4x256xi32>
    %18 = vector.broadcast %6 : vector<1x256xi32> to vector<4x256xi32>
    %19 = arith.cmpi eq, %18, %17 : vector<4x256xi32>
    %c2_i32 = arith.constant 2 : i32
    %20 = vector.broadcast %c2_i32 : i32 to vector<1x256xi32>
    %21 = arith.cmpi ne, %6, %20 : vector<1x256xi32>
    %22 = vector.broadcast %21 : vector<1x256xi1> to vector<4x256xi1>
    %23 = arith.andi %19, %22 : vector<4x256xi1>
    %24 = arith.extui %23 : vector<4x256xi1> to vector<4x256xi32>
    %25 = arith.sitofp %24 : vector<4x256xi32> to vector<4x256xf32>
    %c0_7 = arith.constant 0 : index
    %c0_8 = arith.constant 0 : index
    %26 = vector.load %arg5[%c0_7, %c0_8] : memref<4x256xf32, #tpu.memory_space<vmem>>, vector<4x256xf32>
    %27 = arith.mulf %16, %25 : vector<4x256xf32>
    %28 = arith.addf %26, %27 : vector<4x256xf32>
    %c0_9 = arith.constant 0 : index
    %c0_10 = arith.constant 0 : index
    %29 = vector.load %arg5[%c0_9, %c0_10] : memref<4x256xf32, #tpu.memory_space<vmem>>, vector<4x256xf32>
    tpu.vector_store %arg5[%c0_9, %c0_10], %28 {strides = array<i32>} : memref<4x256xf32, #tpu.memory_space<vmem>>, vector<4x256xf32>,
    %c0_11 = arith.constant 0 : index
    %c0_12 = arith.constant 0 : index
    %30 = vector.load %arg6[%c0_11, %c0_12] : memref<4x256xf32, #tpu.memory_space<vmem>>, vector<4x256xf32>
    %31 = arith.addf %30, %16 : vector<4x256xf32>
    %c0_13 = arith.constant 0 : index
    %c0_14 = arith.constant 0 : index
    %32 = vector.load %arg6[%c0_13, %c0_14] : memref<4x256xf32, #tpu.memory_space<vmem>>, vector<4x256xf32>
    tpu.vector_store %arg6[%c0_13, %c0_14], %31 {strides = array<i32>} : memref<4x256xf32, #tpu.memory_space<vmem>>, vector<4x256xf32>,
    %c0_15 = arith.constant 0 : index
    %c0_16 = arith.constant 0 : index
    %33 = vector.load %arg7[%c0_15, %c0_16] : memref<4x256xf32, #tpu.memory_space<vmem>>, vector<4x256xf32>
    %34 = arith.addf %33, %25 : vector<4x256xf32>
    %c0_17 = arith.constant 0 : index
    %c0_18 = arith.constant 0 : index
    %35 = vector.load %arg7[%c0_17, %c0_18] : memref<4x256xf32, #tpu.memory_space<vmem>>, vector<4x256xf32>
    tpu.vector_store %arg7[%c0_17, %c0_18], %34 {strides = array<i32>} : memref<4x256xf32, #tpu.memory_space<vmem>>, vector<4x256xf32>,
    %c0_i32_19 = arith.constant 0 : i32
    %36 = arith.cmpi eq, %arg1, %c0_i32_19 : i32
    %37 = arith.extui %36 : i1 to i32
    %c0_i32_20 = arith.constant 0 : i32
    %38 = arith.cmpi ne, %37, %c0_i32_20 : i32
    scf.if %38 {
      %c0_21 = arith.constant 0 : index
      %c0_22 = arith.constant 0 : index
      %39 = vector.load %arg5[%c0_21, %c0_22] : memref<4x256xf32, #tpu.memory_space<vmem>>, vector<4x256xf32>
      %cst_23 = arith.constant dense<0.000000e+00> : vector<4xf32>
      %40 = vector.multi_reduction <add>, %39, %cst_23 [1] : vector<4x256xf32> to vector<4xf32>
      %41 = vector.shape_cast %40 : vector<4xf32> to vector<4x1xf32>
      %c0_24 = arith.constant 0 : index
      %c0_25 = arith.constant 0 : index
      %42 = vector.load %arg6[%c0_24, %c0_25] : memref<4x256xf32, #tpu.memory_space<vmem>>, vector<4x256xf32>
      %cst_26 = arith.constant dense<0.000000e+00> : vector<4xf32>
      %43 = vector.multi_reduction <add>, %42, %cst_26 [1] : vector<4x256xf32> to vector<4xf32>
      %44 = vector.shape_cast %43 : vector<4xf32> to vector<4x1xf32>
      %c0_27 = arith.constant 0 : index
      %c0_28 = arith.constant 0 : index
      %45 = vector.load %arg7[%c0_27, %c0_28] : memref<4x256xf32, #tpu.memory_space<vmem>>, vector<4x256xf32>
      %cst_29 = arith.constant dense<0.000000e+00> : vector<4xf32>
      %46 = vector.multi_reduction <add>, %45, %cst_29 [1] : vector<4x256xf32> to vector<4xf32>
      %47 = vector.shape_cast %46 : vector<4xf32> to vector<4x1xf32>
      %48 = tpu.concatenate %41, %44, %47 in 1 : vector<4x1xf32>, vector<4x1xf32>, vector<4x1xf32> -> vector<4x3xf32>
      %c0_30 = arith.constant 0 : index
      %c0_31 = arith.constant 0 : index
      %c0_32 = arith.constant 0 : index
      %49 = vector.load %arg4[%c0_30, %c0_31, %c0_32] : memref<1x4x3xf32, #tpu.memory_space<vmem>>, vector<1x4x3xf32>
      %50 = vector.shape_cast %49 : vector<1x4x3xf32> to vector<4x3xf32>
      %51 = vector.shape_cast %48 : vector<4x3xf32> to vector<1x4x3xf32>
      tpu.vector_store %arg4[%c0_30, %c0_31, %c0_32], %51 {strides = array<i32>} : memref<1x4x3xf32, #tpu.memory_space<vmem>>, vector<1x4x3xf32>,
    } else {
    }
    return
  }
  func.func @transform_0(%arg0: i32, %arg1: i32) -> (i32, i32, i32) {
    %c0_i32 = arith.constant 0 : i32
    %c0_i32_0 = arith.constant 0 : i32
    return %arg0, %c0_i32, %arg1 : i32, i32, i32
  }
  func.func @transform_1(%arg0: i32, %arg1: i32) -> (i32, i32, i32) {
    %c0_i32 = arith.constant 0 : i32
    %c0_i32_0 = arith.constant 0 : i32
    return %arg0, %c0_i32, %arg1 : i32, i32, i32
  }
  func.func @transform_2(%arg0: i32, %arg1: i32) -> (i32, i32, i32) {
    %c0_i32 = arith.constant 0 : i32
    %c0_i32_0 = arith.constant 0 : i32
    %c0_i32_1 = arith.constant 0 : i32
    return %arg0, %c0_i32, %c0_i32_0 : i32, i32, i32
  }
}

</mosaic_0001>

<bundles_post_ra>
// kernel: dice_loss_gai.1
= control target key start
LH: loop header
LB: loop body
LE: loop exit
PB: predicated region body
PF: predicated region fallthrough
CT: control target
= control target key end

     0   :  { %s512_s9 = smov 0   ;;  %s514_s10 = smov 0   ;;  %s563_s0 = inlined_call_operand.vmem [shape: f32[2,4,256], index: 0, kind: input, shape index: {}]   ;;  %s564_s1 = inlined_call_operand.vmem [shape: s32[2,1,256], index: 1, kind: input, shape index: {}]   ;;  %s565_s2 = inlined_call_operand.vmem [shape: f32[2,4,3], index: 2, kind: output, shape index: {}]  }
   0x1   :  { %s516_s11 = smov 0  }
   0x2 LB: > { %s24_s12 = sadd.s32 1, %s489_s10  ;;  %p427_p0 = scmp.ge.s32.totalorder %s493_s11, 1  ;;  %s493_s11 = sphi %s516_s11, %s12_s11   ;;  %s489_s10 = sphi %s514_s10, %s567_s10   ;;  %s485_s9 = sphi %s512_s9, %s566_s9  }
   0x3   : > { %p26_p1 = scmp.ge.s32.totalorder %s24_s12, 2  ;;  %p147_p2 = scmp.lt.s32.totalorder %s493_s11, 3 }
   0x5   : > { %s569_s12 = smov (%p26_p1, %s24_s12), 0  ;;  %p148_p3 = pnand %p427_p0, %p147_p2 }
   0x6   : > { %p181_p4 = scmp.lt.s32.totalorder (!%p148_p3), %s485_s9, 1  ;;  %v261_v0 = vlaneseq (!%p148_p3)  ;;  %vm215_vm0 = vcmask (!%p148_p3), 1043456   ;;  %v495_v12 = vmov (!%p148_p3), 0   ;;  %v496_v22 = vmov (!%p148_p3), 0.0  }
   0x7   : > { %151 = sbr.rel (%p148_p3) target bundleno = 236 (0xec), region = 28  ;;  %vm335_vm8 = vcmask (!%p148_p3), 7168   ;;  %vm337_vm9 = vcmask (!%p148_p3), 15360   ;;  %vm339_vm10 = vcmask (!%p148_p3), 19456  }
   0x8   : > { %v262_v1 = vshrl.u32 (!%p148_p3), %v261_v0, 7 }
   0xa   : > { %v265_v2 = vsub.s32 (!%p148_p3), 0, %v262_v1  ;;  %v269_v3 = vsub.s32 (!%p148_p3), 1, %v262_v1 }
   0xe   : > { %s571_s9 = smov (!%p181_p4, %s485_s9), 1 }
   0xf   : > { %s436_s13 = sshll.u32 %s571_s9, 3  ;;  %s430_s14 = sshll.u32 %s571_s9, 1 }
  0x10   : > { %s188_s17 = scalar_lea.vmem %s563_s0, %s436_s13  ;;  %s197_s20 = scalar_lea.vmem %s564_s1, %s430_s14 }
  0x11   : > { %v210_v4 = vld [vmem:[%s188_s17] sm:$0xff]  ;;  %s431_s21 = sshll.u32 %s571_s9, 2 }
  0x12   : > { %v211_v5 = vld [vmem:[%s197_s20] sm:$0x3]  ;;  %v213_v6 = vcombine.high %v210_v4, %v210_v4  ;;  %v216_v7 = vsel %vm215_vm0, %v210_v4, -inf  ;;  %s202_s24 = scalar_lea.vmem %s565_s2, %s431_s21 }
  0x13   : > { %v266_v8 = vrot.slane %v211_v5, %v265_v2  ;;  %v270_v9 = vrot.slane %v211_v5, %v269_v3  ;;  %v217_v10 = vrot.slane %v216_v7, 4  ;;  %vm273_vm1 = vcmp.ne.s32.totalorder %v211_v5, 2 }
  0x14   : > { %v223_v11 = vsel %vm215_vm0, %v213_v6, -inf  ;;  %v274_v13 = vsel %vm273_vm1, 1, %v495_v12 }
  0x15   : > { %vm271_vm2 = vcmp.eq.s32.totalorder %v266_v8, %v262_v1  ;;  %v218_v14 = vmax.f32 %v216_v7, %v217_v10  ;;  %v224_v15 = vrot.slane %v223_v11, 4  ;;  %v278_v16 = vrot.slane %v274_v13, %v265_v2 }
  0x16   : > { %v282_v17 = vrot.slane %v274_v13, %v269_v3  ;;  %vm272_vm3 = vcmp.eq.s32.totalorder %v270_v9, %v262_v1 }
  0x17   : > { %v219_v18 = vrot.slane %v218_v14, 2  ;;  %v225_v19 = vmax.f32 %v223_v11, %v224_v15  ;;  %vm283_vm4 = vcmp.eq.s32.totalorder %v278_v16, 1 }
  0x18   : > { %vm284_vm5 = vcmp.eq.s32.totalorder %v282_v17, 1  ;;  %vm285_vm6 = vmand %vm271_vm2, %vm283_vm4 }
  0x19   : > { %v220_v20 = vmax.f32 %v218_v14, %v219_v18  ;;  %v226_v21 = vrot.slane %v225_v19, 2  ;;  %vm286_vm7 = vmand %vm272_vm3, %vm284_vm5  ;;  %v432_v23 = vsel %vm285_vm6, 1.0, %v496_v22 }
  0x1a   : > { %v433_v24 = vsel %vm286_vm7, 1.0, %v496_v22 }
  0x1b   : > { %v221_v25 = vrot.slane %v220_v20, 1  ;;  %v227_v26 = vmax.f32 %v225_v19, %v226_v21  ;;  %v294_v27 = vcombine.low %v432_v23, %v433_v24  ;;  %v437_v28 = vcombine.low %v433_v24, %v433_v24 }
  0x1d   : > { %v222_v29 = vmax.f32 %v220_v20, %v221_v25  ;;  %v228_v30 = vrot.slane %v227_v26, 1  ;;  %v330_v31 = vsel %vm215_vm0, %v294_v27, 0.0  ;;  %v331_v32 = vsel %vm215_vm0, %v437_v28, 0.0 }
  0x1e   : > { %v332_v33 = vadd.f32 %v331_v32, %v330_v31 }
  0x1f   : > { %v229_v34 = vmax.f32 %v227_v26, %v228_v30 }
  0x20   : > { %333 = vadd.xlane.f32.xlu1 %v332_v33 }
  0x21   : > { %v232_v35 = vcombine.low %v222_v29, %v229_v34 }
  0x23   : > { %v234_v36 = vsub.f32 %v210_v4, %v232_v35 }
  0x25   : > { %v235_v37 = vmul.f32 1.442695, %v234_v36 }
  0x27   : > { %465 = vpow2.f32 %v235_v37 }
  0x31   : > { %v466_v38 = vpop.eup %465 }
  0x32   : > { %v238_v39 = vcombine.high %v466_v38, %v466_v38  ;;  %v240_v40 = vsel %vm215_vm0, %v466_v38, 0.0 }
  0x33   : > { %v241_v41 = vrot.slane %v240_v40, 4 }
  0x34   : > { %v247_v42 = vsel %vm215_vm0, %v238_v39, 0.0 }
  0x35   : > { %v242_v43 = vadd.f32 %v241_v41, %v240_v40  ;;  %v248_v44 = vrot.slane %v247_v42, 4 }
  0x37   : > { %v243_v45 = vrot.slane %v242_v43, 2  ;;  %v249_v46 = vadd.f32 %v248_v44, %v247_v42 }
  0x39   : > { %v244_v47 = vadd.f32 %v243_v45, %v242_v43  ;;  %v250_v48 = vrot.slane %v249_v46, 2 }
  0x3b   : > { %v245_v49 = vrot.slane %v244_v47, 1  ;;  %v251_v50 = vadd.f32 %v250_v48, %v249_v46 }
  0x3d   : > { %v246_v51 = vadd.f32 %v245_v49, %v244_v47  ;;  %v252_v52 = vrot.slane %v251_v50, 1 }
  0x3f   : > { %v253_v53 = vadd.f32 %v252_v52, %v251_v50  ;;  %467 = vrcp.f32 %v246_v51 }
  0x41   : > { %469 = vrcp.f32 %v253_v53 }
  0x49   : > { %v468_v54 = vpop.eup %467 }
  0x4b   : > { %v470_v55 = vpop.eup %469 }
  0x4c   : > { %v258_v56 = vcombine.low %v468_v54, %v470_v55 }
  0x4e   : > { %v260_v57 = vmul.f32 %v466_v38, %v258_v56 }
  0x50   : > { %v296_v58 = vmul.f32 %v294_v27, %v260_v57  ;;  %v319_v59 = vcombine.high %v260_v57, %v260_v57  ;;  %v321_v63 = vsel %vm215_vm0, %v260_v57, 0.0 }
  0x52   : > { %v310_v60 = vcombine.high %v296_v58, %v296_v58  ;;  %v312_v61 = vsel %vm215_vm0, %v296_v58, 0.0  ;;  %v322_v0 = vsel %vm215_vm0, %v319_v59, 0.0 }
  0x53   : > { %v323_v2 = vadd.f32 %v322_v0, %v321_v63 }
  0x54   : > { %v313_v62 = vsel %vm215_vm0, %v310_v60, 0.0 }
  0x55   : > { %v314_v1 = vadd.f32 %v313_v62, %v312_v61 }
  0x57   : > { %315 = vadd.xlane.f32.xlu0 %v314_v1 }
  0x5b   : > { %324 = vadd.xlane.f32.xlu0 %v323_v2 }
  0xad   : > { %v334_v4 = vpop.xlane.xlu1 %333 }
  0xe4   : > { %v316_v3 = vpop.xlane.xlu0 %315 }
  0xe8   : > { %v325_v5 = vpop.xlane.xlu0 %324 }
  0xe9   : > { %v336_v6 = vsel %vm335_vm8, %v316_v3, %v325_v5 }
  0xea   : > { %v338_v7 = vsel %vm337_vm9, %v336_v6, %v334_v4 }
  0xeb   : > { %340 = vst.msk [vmem:[%s202_s24] sm:$0xf] %vm339_vm10, %v338_v7 }
  0xec PF: > { %s12_s11 = sadd.s32 1, %s493_s11   ;;  %s566_s9 = smov %s489_s10 }
  0xed   : > { %p9_p5 = scmp.ge.s32.totalorder %s12_s11, 4   ;;  %s567_s10 = smov %s569_s12 }
  0xef   :  { %11 = sbr.rel (!%p9_p5) target bundleno = 2 (0x2), region = 69 }

</bundles_post_ra>
